<compile_context>
chip_gen: v5e
topology: v5e:2x2
jax: 0.10.0
libtpu: 0.0.40
codegen_flags: <defaults>
</compile_context>

<pallas_src>
import functools

import jax
import jax.numpy as jnp
from jax.experimental import pallas as pl
from jax.experimental.pallas import tpu as pltpu

HP = 128   # hidden dim padded to full lane width
TP = 128   # num_tasks padded to full lane width (sliced back to num_tasks outside)

SMEM_SPEC = pl.BlockSpec(memory_space=pltpu.MemorySpace.SMEM)
VMEM_SPEC = pl.BlockSpec(memory_space=pltpu.MemorySpace.VMEM)


def _leaky_relu(x, slope):
    # 2 VPU ops (mul + max) instead of cmp+select+mul; valid for 0 <= slope <= 1.
    return jnp.maximum(x, slope * x)


# ---------------------------------------------------------------------------
# Fused kernel: bns_in affine -> [GIN layer x L] -> mean readout -> fcl
# TODO(synk): exact GINConv MLP layout of the original repo is not shown; a
#             2-layer Linear/act/Linear MLP with edge_dim == hidden_dim is used.
# ---------------------------------------------------------------------------
def fused_gnn_kernel(eps_ref,                                  # SMEM [L]
                     x_emb_ref, bnin_s_ref, bnin_b_ref,        # node emb + bns_in
                     gsrc_ref, sdst_ref,                       # one-hot gather/scatter
                     eemb_ref, e_s_ref, e_b_ref,               # per-layer edge emb + bns_edge
                     w1_ref, b1_ref, w2_ref, b2_ref,           # per-layer GIN MLP
                     bn_s_ref, bn_b_ref,                       # per-layer node BN
                     pool_ref, fcw_ref, fcb_ref,               # readout + fcl
                     out_ref, xlast_ref,                       # outputs
                     msg_scr,                                  # VMEM scratch [E,HP]
                     *, layer_num, slope, residual):
    # AtomEncoder output -> bns_in (eval, folded affine); drop_func is Identity.
    # xlast_ref (the [N,HP] output) doubles as the resident node-feature buffer.
    xlast_ref[...] = x_emb_ref[...] * bnin_s_ref[...] + bnin_b_ref[...]

    # Static unrolled layer loop (layer_num is small); weights indexed statically.
    for l in range(layer_num):
        x = xlast_ref[...]                                     # [N, HP] f32

        # Bulk gather x[src] on the MXU via the one-hot [E, N] matrix.
        xe = jnp.dot(gsrc_ref[...], x.astype(jnp.bfloat16),
                     preferred_element_type=jnp.float32)       # [E, HP] f32

        # BondEncoder embedding -> bns_edge affine (eval) + GINE message
        # activation, one vectorized VPU pass over [E, HP].
        # TODO(synk): message activation is plain ReLU (standard GINE); the
        # repo's custom GINConv may instead apply the configured act_func.
        emsg = eemb_ref[l].astype(jnp.float32) * e_s_ref[l] + e_b_ref[l]
        msg_scr[...] = jnp.maximum(xe + emsg, 0.0)

        # Scatter-add messages to destination nodes on the MXU ([N, E] one-hot).
        aggr = jnp.dot(sdst_ref[...], msg_scr[...].astype(jnp.bfloat16),
                       preferred_element_type=jnp.float32)     # [N, HP] f32

        # GIN update: (1 + eps) * x + sum of messages.
        h = (1.0 + eps_ref[l]) * x + aggr

        # GIN MLP: bf16 into the MXU, f32 accumulate; elementwise stays f32.
        h = jnp.dot(h.astype(jnp.bfloat16), w1_ref[l],
                    preferred_element_type=jnp.float32) + b1_ref[l]
        h = _leaky_relu(h, slope)
        h = jnp.dot(h.astype(jnp.bfloat16), w2_ref[l],
                    preferred_element_type=jnp.float32) + b2_ref[l]

        # outer act_func, node BN (eval affine), residual.
        h = _leaky_relu(h, slope)
        h = h * bn_s_ref[l] + bn_b_ref[l]
        if residual:
            h = h + x
        xlast_ref[...] = h

    # readout (mean, normalized pool matrix) + fcl; output lane-padded to 128.
    pooled = jnp.dot(pool_ref[...], xlast_ref[...].astype(jnp.bfloat16),
                     preferred_element_type=jnp.float32)        # [G, HP] f32
    out_ref[...] = jnp.dot(pooled.astype(jnp.bfloat16), fcw_ref[...],
                           preferred_element_type=jnp.float32) + fcb_ref[...]


def fused_forward(eps_vec,
                  x_emb, bnin_s, bnin_b,
                  gsrc, sdst,
                  eemb, e_s, e_b, w1, b1, w2, b2, bn_s, bn_b,
                  pool, fcw, fcb,
                  *, layer_num, num_nodes, num_edges, num_graphs, slope, residual):
    kernel = functools.partial(fused_gnn_kernel, layer_num=layer_num,
                               slope=slope, residual=residual)
    out_pad, xlast_pad = pl.pallas_call(
        kernel,
        out_shape=(jax.ShapeDtypeStruct((num_graphs, TP), jnp.float32),
                   jax.ShapeDtypeStruct((num_nodes, HP), jnp.float32)),
        in_specs=[SMEM_SPEC] + [VMEM_SPEC] * 17,
        out_specs=(VMEM_SPEC, VMEM_SPEC),
        scratch_shapes=[pltpu.VMEM((num_edges, HP), jnp.float32)],   # messages
        compiler_params=pltpu.CompilerParams(vmem_limit_bytes=64 * 1024 * 1024),
    )(eps_vec,
      x_emb, bnin_s, bnin_b,
      gsrc, sdst,
      eemb, e_s, e_b, w1, b1, w2, b2, bn_s, bn_b,
      pool, fcw, fcb)
    return out_pad, xlast_pad


# ---------------------------------------------------------------------------
# Glue: encoders, BN folding, lane padding, parameter packing, full forward
# ---------------------------------------------------------------------------
def fold_bn(gamma, beta, mean, var, eps=1e-5):
    scale = gamma / jnp.sqrt(var + eps)
    shift = beta - mean * scale
    return scale, shift                      # [dim], [dim]


def embed_sum(tables, idx):
    # idx: [M, F] int; tables: list of [vocab_f, H] -> sum over categorical features
    out = 0.0
    for f, tab in enumerate(tables):
        out = out + tab[idx[:, f]]
    return out


def _pad_last(a, target):
    return jnp.pad(a, [(0, 0)] * (a.ndim - 1) + [(0, target - a.shape[-1])])


def gnn_forward(params, feat, edge_attr, src, dst, batch, cfg):
    H = cfg["hidden_dim"]
    L = cfg["layer_num"]
    T = cfg["num_tasks"]
    N = feat.shape[0]
    E = src.shape[0]
    G = cfg["num_graphs"]
    layers = params["layers"]

    # AtomEncoder (embedding lookups, glue) - lane-padded to 128.
    x_emb = _pad_last(embed_sum(params["atom_tables"], feat).astype(jnp.float32), HP)
    bnin_s = _pad_last(params["bn_in"][0][None, :], HP)
    bnin_b = _pad_last(params["bn_in"][1][None, :], HP)

    # One-hot gather [E, N] / scatter [N, E] matrices (bf16, exact 0/1 values);
    # these drive the MXU aggregation inside the kernel instead of a scalar loop.
    node_ids = jnp.arange(N, dtype=jnp.int32)
    gsrc = (src[:, None] == node_ids[None, :]).astype(jnp.bfloat16)    # [E, N]
    sdst = (node_ids[:, None] == dst[None, :]).astype(jnp.bfloat16)    # [N, E]

    # Per-layer constants hoisted + stacked once (loaded into VMEM a single time).
    # Edge embeddings stored bf16 to halve the largest VMEM consumer.
    eemb = jnp.stack([_pad_last(embed_sum(lp["bond_tables"], edge_attr), HP)
                      for lp in layers]).astype(jnp.bfloat16)                       # [L,E,HP]
    e_s = jnp.stack([_pad_last(lp["bn_edge"][0][None, :], HP) for lp in layers])    # [L,1,HP]
    e_b = jnp.stack([_pad_last(lp["bn_edge"][1][None, :], HP) for lp in layers])
    w1 = jnp.stack([jnp.pad(lp["w1"], ((0, HP - H), (0, HP - H)))
                    for lp in layers]).astype(jnp.bfloat16)                         # [L,HP,HP]
    b1 = jnp.stack([_pad_last(lp["b1"][None, :], HP) for lp in layers])             # [L,1,HP]
    w2 = jnp.stack([jnp.pad(lp["w2"], ((0, HP - H), (0, HP - H)))
                    for lp in layers]).astype(jnp.bfloat16)
    b2 = jnp.stack([_pad_last(lp["b2"][None, :], HP) for lp in layers])
    bn_s = jnp.stack([_pad_last(lp["bn_node"][0][None, :], HP) for lp in layers])
    bn_b = jnp.stack([_pad_last(lp["bn_node"][1][None, :], HP) for lp in layers])
    eps_vec = jnp.array([lp["gin_eps"] for lp in layers], jnp.float32)              # [L]

    # readout (mean) matrix built directly as [G, N] (no transpose materialized).
    gids = jnp.arange(G, dtype=batch.dtype)
    mask = (batch[None, :] == gids[:, None]).astype(jnp.float32)                    # [G, N]
    pool = (mask / jnp.maximum(mask.sum(axis=1, keepdims=True), 1.0)).astype(jnp.bfloat16)

    # fcl, padded to a lane-dense output slab.
    fcw = jnp.pad(params["fcl_w"], ((0, HP - H), (0, TP - T))).astype(jnp.bfloat16)
    fcb = _pad_last(params["fcl_b"][None, :], TP)

    out_pad, xlast_pad = fused_forward(
        eps_vec,
        x_emb, bnin_s, bnin_b,
        gsrc, sdst,
        eemb, e_s, e_b, w1, b1, w2, b2, bn_s, bn_b,
        pool, fcw, fcb,
        layer_num=L, num_nodes=N, num_edges=E, num_graphs=G,
        slope=cfg["slope"], residual=cfg["residual"])

    out = out_pad[:, :T]
    x_last = xlast_pad[:, :H]
    # eval mode -> (out, xs[-1])
    return out, x_last


def make_params(key, cfg):
    H, Tsk = cfg["hidden_dim"], cfg["num_tasks"]
    keys = jax.random.split(key, 64)
    kit = iter(keys)

    def nrm(shape, s=0.1):
        return s * jax.random.normal(next(kit), shape, dtype=jnp.float32)

    def bn(dim):
        gamma = 1.0 + nrm((dim,))
        beta = nrm((dim,))
        mean = nrm((dim,))
        var = jnp.abs(nrm((dim,))) + 1.0
        return fold_bn(gamma, beta, mean, var)

    atom_tables = [nrm((v, H), 0.5) for v in cfg["atom_vocab"]]

    layers = []
    for _ in range(cfg["layer_num"]):
        layers.append(dict(
            bond_tables=[nrm((v, H), 0.5) for v in cfg["bond_vocab"]],
            bn_edge=bn(H),
            bn_node=bn(H),
            w1=nrm((H, H)), b1=nrm((H,)),
            w2=nrm((H, H)), b2=nrm((H,)),
            gin_eps=0.0,   # learn_eps init value
        ))

    return dict(
        atom_tables=atom_tables,
        bn_in=bn(H),
        layers=layers,
        fcl_w=nrm((H, Tsk)),
        fcl_b=nrm((Tsk,)),
    )


if __name__ == "__main__":
    cfg = dict(
        hidden_dim=32, edge_dim=32, layer_num=2, num_tasks=4,
        num_graphs=2, residual=True, slope=0.2,
        atom_vocab=[10, 5, 7], bond_vocab=[6, 4],
    )

    N, E, G = 16, 32, cfg["num_graphs"]

    root = jax.random.PRNGKey(0)
    k_par, k_feat, k_edge, k_src, k_dst = jax.random.split(root, 5)

    params = make_params(k_par, cfg)

    # integer categorical atom / bond features
    feat = jnp.stack(
        [jax.random.randint(jax.random.fold_in(k_feat, f), (N,), 0, v)
         for f, v in enumerate(cfg["atom_vocab"])], axis=1)           # [N, 3]
    edge_attr = jnp.stack(
        [jax.random.randint(jax.random.fold_in(k_edge, f), (E,), 0, v)
         for f, v in enumerate(cfg["bond_vocab"])], axis=1)           # [E, 2]

    src = jax.random.randint(k_src, (E,), 0, N).astype(jnp.int32)
    dst = jax.random.randint(k_dst, (E,), 0, N).astype(jnp.int32)
    batch = jnp.concatenate([jnp.zeros((N // 2,), jnp.int32),
                             jnp.ones((N - N // 2,), jnp.int32)])      # [N]

    out, last_x = gnn_forward(params, feat, edge_attr, src, dst, batch, cfg)
    jax.block_until_ready(out)
    jax.block_until_ready(last_x)
    assert out.shape == (G, cfg["num_tasks"])
    assert last_x.shape == (N, cfg["hidden_dim"])
    print("KERNEL_OK")
</pallas_src>

<mosaic_0001>
module attributes {stable_mosaic.version = 11 : i64} {
  func.func @fused_gnn_kernel(%arg0: memref<2xf32, #tpu.memory_space<smem>>, %arg1: memref<16x128xf32, #tpu.memory_space<vmem>>, %arg2: memref<1x128xf32, #tpu.memory_space<vmem>>, %arg3: memref<1x128xf32, #tpu.memory_space<vmem>>, %arg4: memref<32x16xbf16, #tpu.memory_space<vmem>>, %arg5: memref<16x32xbf16, #tpu.memory_space<vmem>>, %arg6: memref<2x32x128xbf16, #tpu.memory_space<vmem>>, %arg7: memref<2x1x128xf32, #tpu.memory_space<vmem>>, %arg8: memref<2x1x128xf32, #tpu.memory_space<vmem>>, %arg9: memref<2x128x128xbf16, #tpu.memory_space<vmem>>, %arg10: memref<2x1x128xf32, #tpu.memory_space<vmem>>, %arg11: memref<2x128x128xbf16, #tpu.memory_space<vmem>>, %arg12: memref<2x1x128xf32, #tpu.memory_space<vmem>>, %arg13: memref<2x1x128xf32, #tpu.memory_space<vmem>>, %arg14: memref<2x1x128xf32, #tpu.memory_space<vmem>>, %arg15: memref<2x16xbf16, #tpu.memory_space<vmem>>, %arg16: memref<128x128xbf16, #tpu.memory_space<vmem>>, %arg17: memref<1x128xf32, #tpu.memory_space<vmem>>, %arg18: memref<2x128xf32, #tpu.memory_space<vmem>>, %arg19: memref<16x128xf32, #tpu.memory_space<vmem>>, %arg20: memref<32x128xf32, #tpu.memory_space<vmem>>) attributes {dimension_semantics = [], scalar_prefetch = 0 : i64, scratch_operands = 1 : i64, tpu.core_type = #tpu.core_type<tc>} {
    %c0 = arith.constant 0 : index
    %c0_0 = arith.constant 0 : index
    %0 = vector.load %arg1[%c0, %c0_0] : memref<16x128xf32, #tpu.memory_space<vmem>>, vector<16x128xf32>
    %c0_1 = arith.constant 0 : index
    %c0_2 = arith.constant 0 : index
    %1 = vector.load %arg2[%c0_1, %c0_2] : memref<1x128xf32, #tpu.memory_space<vmem>>, vector<1x128xf32>
    %2 = vector.broadcast %1 : vector<1x128xf32> to vector<16x128xf32>
    %3 = arith.mulf %0, %2 : vector<16x128xf32>
    %c0_3 = arith.constant 0 : index
    %c0_4 = arith.constant 0 : index
    %4 = vector.load %arg3[%c0_3, %c0_4] : memref<1x128xf32, #tpu.memory_space<vmem>>, vector<1x128xf32>
    %5 = vector.broadcast %4 : vector<1x128xf32> to vector<16x128xf32>
    %6 = arith.addf %3, %5 : vector<16x128xf32>
    %c0_5 = arith.constant 0 : index
    %c0_6 = arith.constant 0 : index
    %7 = vector.load %arg19[%c0_5, %c0_6] : memref<16x128xf32, #tpu.memory_space<vmem>>, vector<16x128xf32>
    tpu.vector_store %arg19[%c0_5, %c0_6], %6 {strides = array<i32>} : memref<16x128xf32, #tpu.memory_space<vmem>>, vector<16x128xf32>,
    %c0_7 = arith.constant 0 : index
    %c0_8 = arith.constant 0 : index
    %8 = vector.load %arg19[%c0_7, %c0_8] : memref<16x128xf32, #tpu.memory_space<vmem>>, vector<16x128xf32>
    %c0_9 = arith.constant 0 : index
    %c0_10 = arith.constant 0 : index
    %9 = vector.load %arg4[%c0_9, %c0_10] : memref<32x16xbf16, #tpu.memory_space<vmem>>, vector<32x16xbf16>
    %10 = arith.truncf %8 : vector<16x128xf32> to vector<16x128xbf16>
    %cst = arith.constant dense<0.000000e+00> : vector<32x128xf32>
    %11 = tpu.matmul %9, %10, %cst {dimension_numbers = #tpu.dot_dimension_numbers<[1], [0], [0], [1], [0, 0, 1, 1], [], []>} : vector<32x16xbf16>, vector<16x128xbf16>, vector<32x128xf32> -> vector<32x128xf32>
    %c0_11 = arith.constant 0 : index
    %c0_12 = arith.constant 0 : index
    %c0_13 = arith.constant 0 : index
    %12 = vector.load %arg6[%c0_11, %c0_12, %c0_13] : memref<2x32x128xbf16, #tpu.memory_space<vmem>>, vector<1x32x128xbf16>
    %13 = vector.shape_cast %12 : vector<1x32x128xbf16> to vector<32x128xbf16>
    %14 = arith.extf %13 : vector<32x128xbf16> to vector<32x128xf32>
    %c0_14 = arith.constant 0 : index
    %c0_15 = arith.constant 0 : index
    %c0_16 = arith.constant 0 : index
    %15 = vector.load %arg7[%c0_14, %c0_15, %c0_16] : memref<2x1x128xf32, #tpu.memory_space<vmem>>, vector<1x1x128xf32>
    %16 = vector.shape_cast %15 : vector<1x1x128xf32> to vector<1x128xf32>
    %17 = vector.broadcast %16 : vector<1x128xf32> to vector<32x128xf32>
    %18 = arith.mulf %14, %17 : vector<32x128xf32>
    %c0_17 = arith.constant 0 : index
    %c0_18 = arith.constant 0 : index
    %c0_19 = arith.constant 0 : index
    %19 = vector.load %arg8[%c0_17, %c0_18, %c0_19] : memref<2x1x128xf32, #tpu.memory_space<vmem>>, vector<1x1x128xf32>
    %20 = vector.shape_cast %19 : vector<1x1x128xf32> to vector<1x128xf32>
    %21 = vector.broadcast %20 : vector<1x128xf32> to vector<32x128xf32>
    %22 = arith.addf %18, %21 : vector<32x128xf32>
    %23 = arith.addf %11, %22 : vector<32x128xf32>
    %cst_20 = arith.constant 0.000000e+00 : f32
    %24 = vector.broadcast %cst_20 : f32 to vector<32x128xf32>
    %25 = arith.maximumf %23, %24 : vector<32x128xf32>
    %c0_21 = arith.constant 0 : index
    %c0_22 = arith.constant 0 : index
    %26 = vector.load %arg20[%c0_21, %c0_22] : memref<32x128xf32, #tpu.memory_space<vmem>>, vector<32x128xf32>
    tpu.vector_store %arg20[%c0_21, %c0_22], %25 {strides = array<i32>} : memref<32x128xf32, #tpu.memory_space<vmem>>, vector<32x128xf32>,
    %c0_23 = arith.constant 0 : index
    %c0_24 = arith.constant 0 : index
    %27 = vector.load %arg5[%c0_23, %c0_24] : memref<16x32xbf16, #tpu.memory_space<vmem>>, vector<16x32xbf16>
    %c0_25 = arith.constant 0 : index
    %c0_26 = arith.constant 0 : index
    %28 = vector.load %arg20[%c0_25, %c0_26] : memref<32x128xf32, #tpu.memory_space<vmem>>, vector<32x128xf32>
    %29 = arith.truncf %28 : vector<32x128xf32> to vector<32x128xbf16>
    %cst_27 = arith.constant dense<0.000000e+00> : vector<16x128xf32>
    %30 = tpu.matmul %27, %29, %cst_27 {dimension_numbers = #tpu.dot_dimension_numbers<[1], [0], [0], [1], [0, 0, 1, 1], [], []>} : vector<16x32xbf16>, vector<32x128xbf16>, vector<16x128xf32> -> vector<16x128xf32>
    %c0_28 = arith.constant 0 : index
    %31 = memref.load %arg0[%c0_28] : memref<2xf32, #tpu.memory_space<smem>>
    %cst_29 = arith.constant 1.000000e+00 : f32
    %32 = arith.addf %cst_29, %31 : f32
    %33 = vector.broadcast %32 : f32 to vector<16x128xf32>
    %34 = arith.mulf %33, %8 : vector<16x128xf32>
    %35 = arith.addf %34, %30 : vector<16x128xf32>
    %36 = arith.truncf %35 : vector<16x128xf32> to vector<16x128xbf16>
    %c0_30 = arith.constant 0 : index
    %c0_31 = arith.constant 0 : index
    %c0_32 = arith.constant 0 : index
    %37 = vector.load %arg9[%c0_30, %c0_31, %c0_32] : memref<2x128x128xbf16, #tpu.memory_space<vmem>>, vector<1x128x128xbf16>
    %38 = vector.shape_cast %37 : vector<1x128x128xbf16> to vector<128x128xbf16>
    %cst_33 = arith.constant dense<0.000000e+00> : vector<16x128xf32>
    %39 = tpu.matmul %36, %38, %cst_33 {dimension_numbers = #tpu.dot_dimension_numbers<[1], [0], [0], [1], [0, 0, 1, 1], [], []>} : vector<16x128xbf16>, vector<128x128xbf16>, vector<16x128xf32> -> vector<16x128xf32>
    %c0_34 = arith.constant 0 : index
    %c0_35 = arith.constant 0 : index
    %c0_36 = arith.constant 0 : index
    %40 = vector.load %arg10[%c0_34, %c0_35, %c0_36] : memref<2x1x128xf32, #tpu.memory_space<vmem>>, vector<1x1x128xf32>
    %41 = vector.shape_cast %40 : vector<1x1x128xf32> to vector<1x128xf32>
    %42 = vector.broadcast %41 : vector<1x128xf32> to vector<16x128xf32>
    %43 = arith.addf %39, %42 : vector<16x128xf32>
    %cst_37 = arith.constant 2.000000e-01 : f32
    %44 = vector.broadcast %cst_37 : f32 to vector<16x128xf32>
    %45 = arith.mulf %44, %43 : vector<16x128xf32>
    %46 = arith.maximumf %43, %45 : vector<16x128xf32>
    %47 = arith.truncf %46 : vector<16x128xf32> to vector<16x128xbf16>
    %c0_38 = arith.constant 0 : index
    %c0_39 = arith.constant 0 : index
    %c0_40 = arith.constant 0 : index
    %48 = vector.load %arg11[%c0_38, %c0_39, %c0_40] : memref<2x128x128xbf16, #tpu.memory_space<vmem>>, vector<1x128x128xbf16>
    %49 = vector.shape_cast %48 : vector<1x128x128xbf16> to vector<128x128xbf16>
    %cst_41 = arith.constant dense<0.000000e+00> : vector<16x128xf32>
    %50 = tpu.matmul %47, %49, %cst_41 {dimension_numbers = #tpu.dot_dimension_numbers<[1], [0], [0], [1], [0, 0, 1, 1], [], []>} : vector<16x128xbf16>, vector<128x128xbf16>, vector<16x128xf32> -> vector<16x128xf32>
    %c0_42 = arith.constant 0 : index
    %c0_43 = arith.constant 0 : index
    %c0_44 = arith.constant 0 : index
    %51 = vector.load %arg12[%c0_42, %c0_43, %c0_44] : memref<2x1x128xf32, #tpu.memory_space<vmem>>, vector<1x1x128xf32>
    %52 = vector.shape_cast %51 : vector<1x1x128xf32> to vector<1x128xf32>
    %53 = vector.broadcast %52 : vector<1x128xf32> to vector<16x128xf32>
    %54 = arith.addf %50, %53 : vector<16x128xf32>
    %cst_45 = arith.constant 2.000000e-01 : f32
    %55 = vector.broadcast %cst_45 : f32 to vector<16x128xf32>
    %56 = arith.mulf %55, %54 : vector<16x128xf32>
    %57 = arith.maximumf %54, %56 : vector<16x128xf32>
    %c0_46 = arith.constant 0 : index
    %c0_47 = arith.constant 0 : index
    %c0_48 = arith.constant 0 : index
    %58 = vector.load %arg13[%c0_46, %c0_47, %c0_48] : memref<2x1x128xf32, #tpu.memory_space<vmem>>, vector<1x1x128xf32>
    %59 = vector.shape_cast %58 : vector<1x1x128xf32> to vector<1x128xf32>
    %60 = vector.broadcast %59 : vector<1x128xf32> to vector<16x128xf32>
    %61 = arith.mulf %57, %60 : vector<16x128xf32>
    %c0_49 = arith.constant 0 : index
    %c0_50 = arith.constant 0 : index
    %c0_51 = arith.constant 0 : index
    %62 = vector.load %arg14[%c0_49, %c0_50, %c0_51] : memref<2x1x128xf32, #tpu.memory_space<vmem>>, vector<1x1x128xf32>
    %63 = vector.shape_cast %62 : vector<1x1x128xf32> to vector<1x128xf32>
    %64 = vector.broadcast %63 : vector<1x128xf32> to vector<16x128xf32>
    %65 = arith.addf %61, %64 : vector<16x128xf32>
    %66 = arith.addf %65, %8 : vector<16x128xf32>
    %c0_52 = arith.constant 0 : index
    %c0_53 = arith.constant 0 : index
    %67 = vector.load %arg19[%c0_52, %c0_53] : memref<16x128xf32, #tpu.memory_space<vmem>>, vector<16x128xf32>
    tpu.vector_store %arg19[%c0_52, %c0_53], %66 {strides = array<i32>} : memref<16x128xf32, #tpu.memory_space<vmem>>, vector<16x128xf32>,
    %c0_54 = arith.constant 0 : index
    %c0_55 = arith.constant 0 : index
    %68 = vector.load %arg19[%c0_54, %c0_55] : memref<16x128xf32, #tpu.memory_space<vmem>>, vector<16x128xf32>
    %c0_56 = arith.constant 0 : index
    %c0_57 = arith.constant 0 : index
    %69 = vector.load %arg4[%c0_56, %c0_57] : memref<32x16xbf16, #tpu.memory_space<vmem>>, vector<32x16xbf16>
    %70 = arith.truncf %68 : vector<16x128xf32> to vector<16x128xbf16>
    %cst_58 = arith.constant dense<0.000000e+00> : vector<32x128xf32>
    %71 = tpu.matmul %69, %70, %cst_58 {dimension_numbers = #tpu.dot_dimension_numbers<[1], [0], [0], [1], [0, 0, 1, 1], [], []>} : vector<32x16xbf16>, vector<16x128xbf16>, vector<32x128xf32> -> vector<32x128xf32>
    %c1 = arith.constant 1 : index
    %c0_59 = arith.constant 0 : index
    %c0_60 = arith.constant 0 : index
    %72 = vector.load %arg6[%c1, %c0_59, %c0_60] : memref<2x32x128xbf16, #tpu.memory_space<vmem>>, vector<1x32x128xbf16>
    %73 = vector.shape_cast %72 : vector<1x32x128xbf16> to vector<32x128xbf16>
    %74 = arith.extf %73 : vector<32x128xbf16> to vector<32x128xf32>
    %c1_61 = arith.constant 1 : index
    %c0_62 = arith.constant 0 : index
    %c0_63 = arith.constant 0 : index
    %75 = vector.load %arg7[%c1_61, %c0_62, %c0_63] : memref<2x1x128xf32, #tpu.memory_space<vmem>>, vector<1x1x128xf32>
    %76 = vector.shape_cast %75 : vector<1x1x128xf32> to vector<1x128xf32>
    %77 = vector.broadcast %76 : vector<1x128xf32> to vector<32x128xf32>
    %78 = arith.mulf %74, %77 : vector<32x128xf32>
    %c1_64 = arith.constant 1 : index
    %c0_65 = arith.constant 0 : index
    %c0_66 = arith.constant 0 : index
    %79 = vector.load %arg8[%c1_64, %c0_65, %c0_66] : memref<2x1x128xf32, #tpu.memory_space<vmem>>, vector<1x1x128xf32>
    %80 = vector.shape_cast %79 : vector<1x1x128xf32> to vector<1x128xf32>
    %81 = vector.broadcast %80 : vector<1x128xf32> to vector<32x128xf32>
    %82 = arith.addf %78, %81 : vector<32x128xf32>
    %83 = arith.addf %71, %82 : vector<32x128xf32>
    %cst_67 = arith.constant 0.000000e+00 : f32
    %84 = vector.broadcast %cst_67 : f32 to vector<32x128xf32>
    %85 = arith.maximumf %83, %84 : vector<32x128xf32>
    %c0_68 = arith.constant 0 : index
    %c0_69 = arith.constant 0 : index
    %86 = vector.load %arg20[%c0_68, %c0_69] : memref<32x128xf32, #tpu.memory_space<vmem>>, vector<32x128xf32>
    tpu.vector_store %arg20[%c0_68, %c0_69], %85 {strides = array<i32>} : memref<32x128xf32, #tpu.memory_space<vmem>>, vector<32x128xf32>,
    %c0_70 = arith.constant 0 : index
    %c0_71 = arith.constant 0 : index
    %87 = vector.load %arg5[%c0_70, %c0_71] : memref<16x32xbf16, #tpu.memory_space<vmem>>, vector<16x32xbf16>
    %c0_72 = arith.constant 0 : index
    %c0_73 = arith.constant 0 : index
    %88 = vector.load %arg20[%c0_72, %c0_73] : memref<32x128xf32, #tpu.memory_space<vmem>>, vector<32x128xf32>
    %89 = arith.truncf %88 : vector<32x128xf32> to vector<32x128xbf16>
    %cst_74 = arith.constant dense<0.000000e+00> : vector<16x128xf32>
    %90 = tpu.matmul %87, %89, %cst_74 {dimension_numbers = #tpu.dot_dimension_numbers<[1], [0], [0], [1], [0, 0, 1, 1], [], []>} : vector<16x32xbf16>, vector<32x128xbf16>, vector<16x128xf32> -> vector<16x128xf32>
    %c1_75 = arith.constant 1 : index
    %91 = memref.load %arg0[%c1_75] : memref<2xf32, #tpu.memory_space<smem>>
    %cst_76 = arith.constant 1.000000e+00 : f32
    %92 = arith.addf %cst_76, %91 : f32
    %93 = vector.broadcast %92 : f32 to vector<16x128xf32>
    %94 = arith.mulf %93, %68 : vector<16x128xf32>
    %95 = arith.addf %94, %90 : vector<16x128xf32>
    %96 = arith.truncf %95 : vector<16x128xf32> to vector<16x128xbf16>
    %c1_77 = arith.constant 1 : index
    %c0_78 = arith.constant 0 : index
    %c0_79 = arith.constant 0 : index
    %97 = vector.load %arg9[%c1_77, %c0_78, %c0_79] : memref<2x128x128xbf16, #tpu.memory_space<vmem>>, vector<1x128x128xbf16>
    %98 = vector.shape_cast %97 : vector<1x128x128xbf16> to vector<128x128xbf16>
    %cst_80 = arith.constant dense<0.000000e+00> : vector<16x128xf32>
    %99 = tpu.matmul %96, %98, %cst_80 {dimension_numbers = #tpu.dot_dimension_numbers<[1], [0], [0], [1], [0, 0, 1, 1], [], []>} : vector<16x128xbf16>, vector<128x128xbf16>, vector<16x128xf32> -> vector<16x128xf32>
    %c1_81 = arith.constant 1 : index
    %c0_82 = arith.constant 0 : index
    %c0_83 = arith.constant 0 : index
    %100 = vector.load %arg10[%c1_81, %c0_82, %c0_83] : memref<2x1x128xf32, #tpu.memory_space<vmem>>, vector<1x1x128xf32>
    %101 = vector.shape_cast %100 : vector<1x1x128xf32> to vector<1x128xf32>
    %102 = vector.broadcast %101 : vector<1x128xf32> to vector<16x128xf32>
    %103 = arith.addf %99, %102 : vector<16x128xf32>
    %cst_84 = arith.constant 2.000000e-01 : f32
    %104 = vector.broadcast %cst_84 : f32 to vector<16x128xf32>
    %105 = arith.mulf %104, %103 : vector<16x128xf32>
    %106 = arith.maximumf %103, %105 : vector<16x128xf32>
    %107 = arith.truncf %106 : vector<16x128xf32> to vector<16x128xbf16>
    %c1_85 = arith.constant 1 : index
    %c0_86 = arith.constant 0 : index
    %c0_87 = arith.constant 0 : index
    %108 = vector.load %arg11[%c1_85, %c0_86, %c0_87] : memref<2x128x128xbf16, #tpu.memory_space<vmem>>, vector<1x128x128xbf16>
    %109 = vector.shape_cast %108 : vector<1x128x128xbf16> to vector<128x128xbf16>
    %cst_88 = arith.constant dense<0.000000e+00> : vector<16x128xf32>
    %110 = tpu.matmul %107, %109, %cst_88 {dimension_numbers = #tpu.dot_dimension_numbers<[1], [0], [0], [1], [0, 0, 1, 1], [], []>} : vector<16x128xbf16>, vector<128x128xbf16>, vector<16x128xf32> -> vector<16x128xf32>
    %c1_89 = arith.constant 1 : index
    %c0_90 = arith.constant 0 : index
    %c0_91 = arith.constant 0 : index
    %111 = vector.load %arg12[%c1_89, %c0_90, %c0_91] : memref<2x1x128xf32, #tpu.memory_space<vmem>>, vector<1x1x128xf32>
    %112 = vector.shape_cast %111 : vector<1x1x128xf32> to vector<1x128xf32>
    %113 = vector.broadcast %112 : vector<1x128xf32> to vector<16x128xf32>
    %114 = arith.addf %110, %113 : vector<16x128xf32>
    %cst_92 = arith.constant 2.000000e-01 : f32
    %115 = vector.broadcast %cst_92 : f32 to vector<16x128xf32>
    %116 = arith.mulf %115, %114 : vector<16x128xf32>
    %117 = arith.maximumf %114, %116 : vector<16x128xf32>
    %c1_93 = arith.constant 1 : index
    %c0_94 = arith.constant 0 : index
    %c0_95 = arith.constant 0 : index
    %118 = vector.load %arg13[%c1_93, %c0_94, %c0_95] : memref<2x1x128xf32, #tpu.memory_space<vmem>>, vector<1x1x128xf32>
    %119 = vector.shape_cast %118 : vector<1x1x128xf32> to vector<1x128xf32>
    %120 = vector.broadcast %119 : vector<1x128xf32> to vector<16x128xf32>
    %121 = arith.mulf %117, %120 : vector<16x128xf32>
    %c1_96 = arith.constant 1 : index
    %c0_97 = arith.constant 0 : index
    %c0_98 = arith.constant 0 : index
    %122 = vector.load %arg14[%c1_96, %c0_97, %c0_98] : memref<2x1x128xf32, #tpu.memory_space<vmem>>, vector<1x1x128xf32>
    %123 = vector.shape_cast %122 : vector<1x1x128xf32> to vector<1x128xf32>
    %124 = vector.broadcast %123 : vector<1x128xf32> to vector<16x128xf32>
    %125 = arith.addf %121, %124 : vector<16x128xf32>
    %126 = arith.addf %125, %68 : vector<16x128xf32>
    %c0_99 = arith.constant 0 : index
    %c0_100 = arith.constant 0 : index
    %127 = vector.load %arg19[%c0_99, %c0_100] : memref<16x128xf32, #tpu.memory_space<vmem>>, vector<16x128xf32>
    tpu.vector_store %arg19[%c0_99, %c0_100], %126 {strides = array<i32>} : memref<16x128xf32, #tpu.memory_space<vmem>>, vector<16x128xf32>,
    %c0_101 = arith.constant 0 : index
    %c0_102 = arith.constant 0 : index
    %128 = vector.load %arg15[%c0_101, %c0_102] : memref<2x16xbf16, #tpu.memory_space<vmem>>, vector<2x16xbf16>
    %c0_103 = arith.constant 0 : index
    %c0_104 = arith.constant 0 : index
    %129 = vector.load %arg19[%c0_103, %c0_104] : memref<16x128xf32, #tpu.memory_space<vmem>>, vector<16x128xf32>
    %130 = arith.truncf %129 : vector<16x128xf32> to vector<16x128xbf16>
    %cst_105 = arith.constant dense<0.000000e+00> : vector<2x128xf32>
    %131 = tpu.matmul %128, %130, %cst_105 {dimension_numbers = #tpu.dot_dimension_numbers<[1], [0], [0], [1], [0, 0, 1, 1], [], []>} : vector<2x16xbf16>, vector<16x128xbf16>, vector<2x128xf32> -> vector<2x128xf32>
    %132 = arith.truncf %131 : vector<2x128xf32> to vector<2x128xbf16>
    %c0_106 = arith.constant 0 : index
    %c0_107 = arith.constant 0 : index
    %133 = vector.load %arg16[%c0_106, %c0_107] : memref<128x128xbf16, #tpu.memory_space<vmem>>, vector<128x128xbf16>
    %cst_108 = arith.constant dense<0.000000e+00> : vector<2x128xf32>
    %134 = tpu.matmul %132, %133, %cst_108 {dimension_numbers = #tpu.dot_dimension_numbers<[1], [0], [0], [1], [0, 0, 1, 1], [], []>} : vector<2x128xbf16>, vector<128x128xbf16>, vector<2x128xf32> -> vector<2x128xf32>
    %c0_109 = arith.constant 0 : index
    %c0_110 = arith.constant 0 : index
    %135 = vector.load %arg17[%c0_109, %c0_110] : memref<1x128xf32, #tpu.memory_space<vmem>>, vector<1x128xf32>
    %136 = vector.broadcast %135 : vector<1x128xf32> to vector<2x128xf32>
    %137 = arith.addf %134, %136 : vector<2x128xf32>
    %c0_111 = arith.constant 0 : index
    %c0_112 = arith.constant 0 : index
    %138 = vector.load %arg18[%c0_111, %c0_112] : memref<2x128xf32, #tpu.memory_space<vmem>>, vector<2x128xf32>
    tpu.vector_store %arg18[%c0_111, %c0_112], %137 {strides = array<i32>} : memref<2x128xf32, #tpu.memory_space<vmem>>, vector<2x128xf32>,
    return
  }
}

</mosaic_0001>

<bundles_post_ra>
// kernel: tpu_custom_call.1
= control target key start
LH: loop header
LB: loop body
LE: loop exit
PB: predicated region body
PF: predicated region fallthrough
CT: control target
= control target key end

     0   :  { %s1691_s0 = inlined_call_operand.hbm [shape: f32[2], index: 0, kind: input, shape index: {}]   ;;  %s1692_s1 = inlined_call_operand.vmem [shape: f32[16,128], index: 1, kind: input, shape index: {}]   ;;  %s1693_s2 = inlined_call_operand.hbm [shape: f32[1,128], index: 2, kind: input, shape index: {}]   ;;  %s1694_s3 = inlined_call_operand.hbm [shape: f32[1,128], index: 3, kind: input, shape index: {}]   ;;  %s1695_s4 = inlined_call_operand.vmem [shape: bf16[32,16], index: 4, kind: input, shape index: {}]   ;;  %s1696_s5 = inlined_call_operand.vmem [shape: bf16[16,32], index: 5, kind: input, shape index: {}]   ;;  %s1697_s6 = inlined_call_operand.hbm [shape: bf16[2,32,128], index: 6, kind: input, shape index: {}]   ;;  %s1698_s7 = inlined_call_operand.vmem [shape: f32[2,1,128], index: 7, kind: input, shape index: {}]   ;;  %s1699_s8 = inlined_call_operand.vmem [shape: f32[2,1,128], index: 8, kind: input, shape index: {}]   ;;  %s1700_s9 = inlined_call_operand.hbm [shape: bf16[2,128,128], index: 9, kind: input, shape index: {}]   ;;  %s1701_s10 = inlined_call_operand.vmem [shape: f32[2,1,128], index: 10, kind: input, shape index: {}]   ;;  %s1702_s11 = inlined_call_operand.hbm [shape: bf16[2,128,128], index: 11, kind: input, shape index: {}]   ;;  %s1703_s12 = inlined_call_operand.vmem [shape: f32[2,1,128], index: 12, kind: input, shape index: {}]   ;;  %s1704_s13 = inlined_call_operand.vmem [shape: f32[2,1,128], index: 13, kind: input, shape index: {}]   ;;  %s1705_s14 = inlined_call_operand.vmem [shape: f32[2,1,128], index: 14, kind: input, shape index: {}]   ;;  %s1706_s15 = inlined_call_operand.vmem [shape: bf16[2,16], index: 15, kind: input, shape index: {}]   ;;  %s1707_s16 = inlined_call_operand.hbm [shape: bf16[128,128], index: 16, kind: input, shape index: {}]   ;;  %s1708_s17 = inlined_call_operand.vmem [shape: f32[1,128], index: 17, kind: input, shape index: {}]   ;;  %s1709_s18 = inlined_call_operand.hbm [shape: f32[2,128], index: 18, kind: output, shape index: {0}]   ;;  %s1710_s19 = inlined_call_operand.hbm [shape: f32[16,128], index: 19, kind: output, shape index: {1}]  }
   0x1   :  { %1714 = sst [smem:[#allocation26_spill]] %s1691_s0 }
   0x2   :  { %1715 = sst [smem:[#allocation27_spill]] %s1692_s1 }
   0x3   :  { %1716 = sst [smem:[#allocation28_spill]] %s1693_s2 }
   0x4   :  { %1717 = sst [smem:[#allocation29_spill]] %s1694_s3 }
   0x5   :  { %1718 = sst [smem:[#allocation30_spill]] %s1709_s18 }
   0x6   :  { %25 = vsyncpa [#allocation6], 0 }
   0x7   :  { %26 = vsyncpa [#allocation4], 0 }
   0x8   :  { %27 = vsyncpa [#allocation9], 0 }
   0x9   :  { %28 = vsyncpa [#allocation12], 0 }
   0xa   :  { %29 = vsyncpa [#allocation15], 0 }
   0xb   :  { %30 = vsyncpa [#allocation5], 0  ;;  %s1719_s20 = sld [smem:[#allocation29_spill]] }
  0x11   :  { %s59_s21 = sshll.u32 %s1719_s20, 4  ;;  %s60_s21 = int_to_ptr.hbm [resolvable:$true] %s59_s21 }
  0x12   :  { %31 = vsyncpa [#allocation18], 0  ;;  %s1446_s1 = smov [#allocation8]   ;;  %s90_s24 = sshll.u32 %s1700_s9, 4  ;;  %s91_s24 = int_to_ptr.hbm [resolvable:$true] %s90_s24 }
  0x13   :  { %s61_s22 = sshll.u32 %s1446_s1, 4  ;;  %s1447_s25 = smov [#allocation11]   ;;  %s62_s22 = int_to_ptr.vmem [resolvable:$true] %s61_s22 }
  0x14   :  { %64 = dma.hbm_to_vmem [thread:$0]  %s60_s21, 16, %s62_s22, [#allocation9]  }
  0x15   :  { %s92_s3 = sshll.u32 %s1447_s25, 4  ;;  %s1720_s28 = sld [smem:[#allocation26_spill]]  ;;  %s93_s3 = int_to_ptr.vmem [resolvable:$true] %s92_s3 }
  0x16   :  { %s1712_s0 = smov 64   ;;  %s1449_s30 = smov 4  }
  0x17   :  { %98 = dma.hbm_to_vmem [thread:$0]  %s91_s24, 2048, %s93_s3, [#allocation12], %s1712_s0, %s1712_s0, %s1449_s30  }
  0x18   :  { %s1721_s1 = sld [smem:[#allocation28_spill]]  ;;  %s1450_s9 = smov [#allocation3]  }
  0x19   :  { %s1451_s2 = smov [#allocation7]   ;;  %s73_s27 = sshll.u32 %s1697_s6, 4  ;;  %s74_s27 = int_to_ptr.hbm [resolvable:$true] %s73_s27 }
  0x1a   :  { %s50_s23 = sshll.u32 %s1451_s2, 4  ;;  %s105_s24 = sshll.u32 %s1702_s11, 4  ;;  %s51_s23 = int_to_ptr.vmem [resolvable:$true] %s50_s23  ;;  %s106_s24 = int_to_ptr.hbm [resolvable:$true] %s105_s24 }
  0x1b   :  { %s37_s29 = sshll.u32 %s1720_s28, 4  ;;  %s1452_s3 = smov [#allocation10]   ;;  %s38_s29 = int_to_ptr.hbm [resolvable:$true] %s37_s29 }
  0x1c   :  { %40 = dma.hbm_to_smem %s38_s29, 16, %s1450_s9, [#allocation6]  }
  0x1d   :  { %s75_s0 = sshll.u32 %s1452_s3, 4  ;;  %s1722_s29 = smov 64   ;;  %s76_s0 = int_to_ptr.vmem [resolvable:$true] %s75_s0 }
  0x1e   :  { %s48_s22 = sshll.u32 %s1721_s1, 4  ;;  %s1453_s20 = smov [#allocation13]   ;;  %s49_s22 = int_to_ptr.hbm [resolvable:$true] %s48_s22 }
  0x1f   :  { %53 = dma.hbm_to_vmem [thread:$0]  %s49_s22, 16, %s51_s23, [#allocation4]  }
  0x20   :  { %81 = dma.hbm_to_vmem [thread:$0]  %s74_s27, 512, %s76_s0, [#allocation9], %s1722_s29, %s1722_s29, %s1449_s30  }
  0x21   :  { %s107_s21 = sshll.u32 %s1453_s20, 4  ;;  %s126_s6 = sshll.u32 %s1707_s16, 4  ;;  %s108_s21 = int_to_ptr.vmem [resolvable:$true] %s107_s21  ;;  %s127_s6 = int_to_ptr.hbm [resolvable:$true] %s126_s6 }
  0x22   :  { %113 = dma.hbm_to_vmem [thread:$0]  %s106_s24, 2048, %s108_s21, [#allocation12], %s1722_s29, %s1722_s29, %s1449_s30  }
  0x23   :  { %s1454_s11 = smov [#allocation14]  }
  0x24   :  { %s128_s18 = sshll.u32 %s1454_s11, 4  ;;  %s129_s18 = int_to_ptr.vmem [resolvable:$true] %s128_s18 }
  0x25   :  { %134 = dma.hbm_to_vmem [thread:$0]  %s127_s6, 1024, %s129_s18, [#allocation15], %s1722_s29, %s1722_s29, %s1449_s30  }
  0x26   :  { %1432 = dma.done.wait [#allocation6], 16  }
  0x27   :  { %1433 = vsyncadd [#allocation6], 4294967280 }
  0x28   :  { %1434 = dma.done.wait [#allocation4], 16  }
  0x29   :  { %1435 = vsyncadd [#allocation4], 4294967280 }
  0x2a   :  { %1436 = dma.done.wait [#allocation9], 528  }
  0x2b   :  { %1437 = vsyncadd [#allocation9], 4294966768 }
  0x2c   :  { %1438 = dma.done.wait [#allocation12], 4096  }
  0x2d   :  { %1439 = vsyncadd [#allocation12], 4294963200 }
  0x2e   :  { %1440 = dma.done.wait [#allocation15], 1024  }
  0x2f   :  { %1441 = vsyncadd [#allocation15], 4294966272 }
  0x30   :  { %165 = sfence }
  0x31   :  { %s1723_s22 = sld [smem:[#allocation27_spill]]  ;;  %v1213_v2 = vld [vmem:[#allocation7] ss:$0 sm:$0xff]  ;;  %v1214_v3 = vld [vmem:[#allocation8] ss:$0 sm:$0xff]  ;;  %vm224_vm0 = vcmask 130048  }
  0x32   :  { %v1136_v9 = vld [vmem:[%s1695_s4] sm:$0xff]  ;;  %v1137_v10 = vld [vmem:[%s1695_s4 + $0x8] sm:$0xff]  ;;  %v1145_v15 = vld [vmem:[#allocation11 + $0x30] sm:$0xff]  ;;  %vm271_vm1 = vcmask 261120   ;;  %s289_s1 = sld [smem:[#allocation3]]  ;;  %s916_s2 = sshll.u32 %s1710_s19, 4  ;;  %s917_s2 = int_to_ptr.hbm [resolvable:$true] %s916_s2 }
  0x33   :  { %v1146_v12 = vld [vmem:[#allocation11 + $0x38] sm:$0xff]  ;;  %v1198_v14 = vld [vmem:[#allocation10 + $0x8] sm:$0xff]   ;;  %v1183_v17 = vld [vmem:[#allocation10] sm:$0xff]   ;;  %s1034_s29 = sld [smem:[#allocation3 + $0x1]]  ;;  %s1456_s23 = smov 128  }
  0x34   :  { %365 = vmatpush.bf16.msra.mxu2 %v1146_v12  ;;  %v1188_v16 = vunpack.c.l.bf16 %v1198_v14  ;;  %v1144_v18 = vld [vmem:[#allocation11 + $0x28] sm:$0xff]  ;;  %v1215_v19 = vld [vmem:[%s1698_s7] ss:$0 sm:$0xff]  ;;  %v1185_v20 = vunpack.c.h.bf16 %v1183_v17  ;;  %v1189_v21 = vunpack.c.h.bf16 %v1198_v14  ;;  %v1184_v22 = vunpack.c.l.bf16 %v1183_v17  ;;  %v1143_v25 = vld [vmem:[#allocation11 + $0x20] sm:$0xff]  ;;  %s1457_s30 = smov 8   ;;  %s1458_s26 = smov [#allocation16]  }
  0x35   :  { %v1216_v26 = vld [vmem:[%s1699_s8] ss:$0 sm:$0xff]  ;;  %v1141_v47 = vld [vmem:[#allocation11 + $0x10] sm:$0xff]  ;;  %v1140_v48 = vld [vmem:[#allocation11 + $0x8] sm:$0xff]  ;;  %s904_s27 = sshll.u32 %s1458_s26, 4  ;;  %s905_s27 = int_to_ptr.vmem [resolvable:$true] %s904_s27 }
  0x36   :  { %v204_v23 = vmul.f32 %v1215_v19, %v1188_v16  ;;  %v203_v27 = vmul.f32 %v1215_v19, %v1185_v20  ;;  %v205_v28 = vmul.f32 %v1215_v19, %v1189_v21  ;;  %v202_v29 = vmul.f32 %v1215_v19, %v1184_v22  ;;  %v1142_v31 = vld [vmem:[#allocation11 + $0x18] sm:$0xff]  ;;  %v1139_v49 = vld [vmem:[#allocation11] sm:$0xff]  ;;  %v1153_v51 = vld [vmem:[#allocation13 + $0x30] sm:$0xff] }
  0x37   :  { %v167_v0 = vld [vmem:[%s1723_s22] sm:$0xff]  ;;  %v168_v1 = vld [vmem:[%s1723_s22 + $0x8] sm:$0xff]  ;;  %v1149_v63 = vld [vmem:[#allocation13 + $0x10] sm:$0xff] }
  0x38   :  { %v173_v4 = vmul.f32 %v1213_v2, %v167_v0  ;;  %v174_v5 = vmul.f32 %v1213_v2, %v168_v1  ;;  %366 = vmatpush.bf16.msra.mxu2 %v1145_v15  ;;  %v212_v30 = vadd.f32 %v1216_v26, %v204_v23  ;;  %v211_v32 = vadd.f32 %v1216_v26, %v203_v27  ;;  %v1138_v46 = vld [vmem:[%s1696_s5] sm:$0xff]  ;;  %v1152_v52 = vld [vmem:[#allocation13 + $0x28] sm:$0xff]  ;;  %s290_s9 = sadd.f32 1.0, %s289_s1 }
  0x39   :  { %v213_v33 = vadd.f32 %v1216_v26, %v205_v28  ;;  %v210_v34 = vadd.f32 %v1216_v26, %v202_v29  ;;  %v1154_v50 = vld [vmem:[#allocation13 + $0x38] sm:$0xff]  ;;  %v1151_v53 = vld [vmem:[#allocation13 + $0x20] sm:$0xff]  ;;  %v1148_v0 = vld [vmem:[#allocation13 + $0x8] sm:$0xff] }
  0x3a   :  { %v1598_v6 = vadd.f32 %v1214_v3, %v173_v4  ;;  %v1600_v7 = vadd.f32 %v1214_v3, %v174_v5  ;;  %v291_v55 = vstv %s290_s9  ;;  %v1150_v62 = vld [vmem:[#allocation13 + $0x18] sm:$0xff]  ;;  %v1147_v1 = vld [vmem:[#allocation13] sm:$0xff] }
  0x3b   :  { %v1217_v3 = vld [vmem:[%s1701_s10] ss:$0 sm:$0xff] }
  0x3c   :  { %v189_v8 = vpack.c.bf16 %v1600_v7, %v1598_v6  ;;  %367 = vmatpush.bf16.msra.mxu2 %v1144_v18  ;;  %v292_v56 = vmul.f32 %v291_v55, %v1598_v6  ;;  %v293_v57 = vmul.f32 %v291_v55, %v1600_v7  ;;  %v1218_v14 = vld [vmem:[%s1703_s12] ss:$0 sm:$0xff] }
  0x3d   :  { %v1219_v19 = vld [vmem:[%s1704_s13] ss:$0 sm:$0xff] }
  0x3e   :  { %238 = vmatpush.bf16.msra.mxu3 %v189_v8  ;;  %v1220_v23 = vld [vmem:[%s1705_s14] ss:$0 sm:$0xff] }
  0x40   :  { %368 = vmatpush.bf16.msra.mxu2 %v1143_v25 }
  0x41   :  { %946 = vmatmul.msk.bf16.vlgmr.msra.gmra.mxu3 %vm224_vm0, %v1136_v9 }
  0x42   :  { %452 = vmatpush.bf16.msrb.mxu3 %v1154_v50 }
  0x44   :  { %369 = vmatpush.bf16.msra.mxu2 %v1142_v31 }
  0x46   :  { %453 = vmatpush.bf16.msrb.mxu3 %v1153_v51 }
  0x48   :  { %370 = vmatpush.bf16.msra.mxu2 %v1141_v47  ;;  %v1222_v47 = vld [vmem:[%s1699_s8 + $0x1] ss:$0 sm:$0xff] }
  0x4a   :  { %454 = vmatpush.bf16.msrb.mxu3 %v1152_v52  ;;  %v1161_v52 = vld [vmem:[#allocation11 + $0x58] sm:$0xff] }
  0x4c   :  { %371 = vmatpush.bf16.msra.mxu2 %v1140_v48 }
  0x4e   :  { %455 = vmatpush.bf16.msrb.mxu3 %v1151_v53 }
  0x50   :  { %372 = vmatpush.bf16.msra.mxu2 %v1139_v49 }
  0x51   :  { %947 = vmatmul.msk.bf16.gmra.mxu3 %vm224_vm0, %v1137_v10 }
  0x52   :  { %456 = vmatpush.bf16.msrb.mxu3 %v1150_v62 }
  0x56   :  { %457 = vmatpush.bf16.msrb.mxu3 %v1149_v63 }
  0x5a   :  { %458 = vmatpush.bf16.msrb.mxu3 %v1148_v0 }
  0x5e   :  { %459 = vmatpush.bf16.msrb.mxu3 %v1147_v1 }
  0xc4   :  { %v240_v11 = vpop.f32.mrf.mxu3 }
  0xc5   :  { %v241_v39 = vadd.f32 %v240_v11, %v210_v34  ;;  %v1165_v34 = vld [vmem:[#allocation11 + $0x78] sm:$0xff] }
  0xc7   :  { %v250_v44 = vmax.f32 %v241_v39, 0.0  ;;  %v1163_v39 = vld [vmem:[#allocation11 + $0x68] sm:$0xff] }
  0xcc   :  { %v242_v13 = vpop.f32.mrf.mxu3 }
  0xcd   :  { %v243_v37 = vadd.f32 %v242_v13, %v211_v32  ;;  %v1155_v32 = vld [vmem:[%s1695_s4] sm:$0xff] }
  0xcf   :  { %v251_v42 = vmax.f32 %v243_v37, 0.0 }
  0xd1   :  { %v264_v45 = vpack.c.bf16 %v251_v42, %v250_v44 }
  0xd4   :  { %v245_v24 = vpop.f32.mrf.mxu3 }
  0xd5   :  { %v246_v35 = vadd.f32 %v245_v24, %v212_v30 }
  0xd7   :  { %v252_v40 = vmax.f32 %v246_v35, 0.0  ;;  %v1199_v35 = vld [vmem:[#allocation10 + $0x18] sm:$0xff]  }
  0xd8   :  { %v1196_v37 = vunpack.c.l.bf16 %v1199_v35  ;;  %v1197_v42 = vunpack.c.h.bf16 %v1199_v35  ;;  %v1181_v35 = vld [vmem:[#allocation14 + $0x38] sm:$0xff] }
  0xdc   :  { %v247_v36 = vpop.f32.mrf.mxu3 }
  0xdd   :  { %v248_v38 = vadd.f32 %v247_v36, %v213_v33  ;;  %v1156_v33 = vld [vmem:[%s1695_s4 + $0x8] sm:$0xff]  ;;  %v1164_v36 = vld [vmem:[#allocation11 + $0x70] sm:$0xff]  ;;  %s1724_s4 = sld [smem:[#allocation30_spill]] }
  0xdf   :  { %v253_v41 = vmax.f32 %v248_v38, 0.0  ;;  %v1191_v38 = vld [vmem:[#allocation10 + $0x10] sm:$0xff]  }
  0xe1   :  { %v265_v43 = vpack.c.bf16 %v253_v41, %v252_v40  ;;  %v1221_v40 = vld [vmem:[%s1698_s7 + $0x1] ss:$0 sm:$0xff]  ;;  %v1193_v41 = vunpack.c.h.bf16 %v1191_v38 }
  0xe2   :  { %v509_v44 = vmul.f32 %v1221_v40, %v1196_v37  ;;  %v510_v49 = vmul.f32 %v1221_v40, %v1197_v42  ;;  %v1224_v37 = vld [vmem:[%s1703_s12 + $0x1] ss:$0 sm:$0xff] }
  0xe3   :  { %281 = vmatpush.bf16.msra.mxu1 %v265_v43  ;;  %v1192_v43 = vunpack.c.l.bf16 %v1191_v38  ;;  %v508_v48 = vmul.f32 %v1221_v40, %v1193_v41  ;;  %v1225_v42 = vld [vmem:[%s1704_s13 + $0x1] ss:$0 sm:$0xff]  ;;  %s906_s3 = sshll.u32 %s1724_s4, 4  ;;  %s907_s3 = int_to_ptr.hbm [resolvable:$true] %s906_s3 }
  0xe4   :  { %v518_v51 = vadd.f32 %v1222_v47, %v509_v44 }
  0xe5   :  { %v507_v50 = vmul.f32 %v1221_v40, %v1192_v43  ;;  %v517_v53 = vadd.f32 %v1222_v47, %v508_v48  ;;  %v1178_v43 = vld [vmem:[#allocation14 + $0x20] sm:$0xff]  ;;  %v1177_v48 = vld [vmem:[#allocation14 + $0x18] sm:$0xff] }
  0xe7   :  { %282 = vmatpush.bf16.msra.mxu1 %v264_v45  ;;  %v516_v55 = vadd.f32 %v1222_v47, %v507_v50 }
  0xea   :  { %952 = vmatmul.msk.bf16.vlgmr.msra.gmra.mxu1 %vm271_vm1, %v1138_v46  ;;  %v1162_v46 = vld [vmem:[#allocation11 + $0x60] sm:$0xff] }
 0x167   :  { %v284_v54 = vpop.f32.mrf.mxu1 }
 0x168   :  { %v294_v59 = vadd.f32 %v292_v56, %v284_v54  ;;  %v519_v54 = vadd.f32 %v1222_v47, %v510_v49 }
 0x16f   :  { %v286_v58 = vpop.f32.mrf.mxu1 }
 0x170   :  { %v295_v60 = vadd.f32 %v293_v57, %v286_v58 }
 0x172   :  { %v296_v61 = vpack.c.bf16 %v295_v60, %v294_v59 }
 0x174   :  { %373 = vmatmul.bf16.vlgmr.msra.gmra.mxu2 %v296_v61 }
 0x1f7   :  { %v374_v2 = vpop.f32.mrf.mxu2 }
 0x1f8   :  { %v375_v4 = vadd.f32 %v1217_v3, %v374_v2 }
 0x1fa   :  { %v379_v8 = vmul.f32 0.2, %v375_v4 }
 0x1fc   :  { %v381_v11 = vmax.f32 %v375_v4, %v379_v8  ;;  %v1160_v4 = vld [vmem:[#allocation11 + $0x50] sm:$0xff]  ;;  %v1158_v8 = vld [vmem:[#allocation11 + $0x40] sm:$0xff] }
 0x1ff   :  { %v376_v5 = vpop.f32.mrf.mxu2 }
 0x200   :  { %v377_v9 = vadd.f32 %v1217_v3, %v376_v5  ;;  %v1157_v3 = vld [vmem:[%s1696_s5] sm:$0xff]  ;;  %v1159_v5 = vld [vmem:[#allocation11 + $0x48] sm:$0xff]  ;;  %s594_s5 = sadd.f32 1.0, %s1034_s29 }
 0x202   :  { %v380_v10 = vmul.f32 0.2, %v377_v9 }
 0x204   :  { %v382_v12 = vmax.f32 %v377_v9, %v380_v10  ;;  %v1173_v9 = vld [vmem:[#allocation13 + $0x78] sm:$0xff]  ;;  %v1172_v10 = vld [vmem:[#allocation13 + $0x70] sm:$0xff] }
 0x205   :  { %760 = vmatpush.bf16.msrb.mxu2 %v1173_v9 }
 0x206   :  { %v383_v13 = vpack.c.bf16 %v382_v12, %v381_v11  ;;  %v1171_v11 = vld [vmem:[#allocation13 + $0x68] sm:$0xff]  ;;  %v1170_v12 = vld [vmem:[#allocation13 + $0x60] sm:$0xff] }
 0x208   :  { %460 = vmatmul.bf16.vlgmr.msrb.gmra.mxu3 %v383_v13 }
 0x209   :  { %761 = vmatpush.bf16.msrb.mxu2 %v1172_v10 }
 0x20d   :  { %762 = vmatpush.bf16.msrb.mxu2 %v1171_v11 }
 0x211   :  { %763 = vmatpush.bf16.msrb.mxu2 %v1170_v12 }
 0x28b   :  { %v461_v15 = vpop.f32.mrf.mxu3 }
 0x28c   :  { %v462_v16 = vadd.f32 %v1218_v14, %v461_v15 }
 0x28e   :  { %v466_v17 = vmul.f32 0.2, %v462_v16 }
 0x290   :  { %v468_v18 = vmax.f32 %v462_v16, %v466_v17 }
 0x292   :  { %v474_v22 = vmul.f32 %v1219_v19, %v468_v18 }
 0x293   :  { %v463_v20 = vpop.f32.mrf.mxu3 }
 0x294   :  { %v464_v21 = vadd.f32 %v1218_v14, %v463_v20  ;;  %v480_v26 = vadd.f32 %v1220_v23, %v474_v22  ;;  %v595_v14 = vstv %s594_s5  ;;  %v1168_v22 = vld [vmem:[#allocation13 + $0x50] sm:$0xff] }
 0x296   :  { %v467_v24 = vmul.f32 0.2, %v464_v21  ;;  %v1637_v29 = vadd.f32 %v480_v26, %v1598_v6  ;;  %v1223_v26 = vld [vmem:[%s1701_s10 + $0x1] ss:$0 sm:$0xff] }
 0x298   :  { %v469_v25 = vmax.f32 %v464_v21, %v467_v24  ;;  %v596_v15 = vmul.f32 %v595_v14, %v1637_v29  ;;  %v1169_v21 = vld [vmem:[#allocation13 + $0x58] sm:$0xff]  ;;  %v1166_v24 = vld [vmem:[#allocation13 + $0x40] sm:$0xff] }
 0x299   :  { %764 = vmatpush.bf16.msrb.mxu2 %v1169_v21 }
 0x29a   :  { %v475_v27 = vmul.f32 %v1219_v19, %v469_v25 }
 0x29c   :  { %v481_v28 = vadd.f32 %v1220_v23, %v475_v27  ;;  %v1167_v23 = vld [vmem:[#allocation13 + $0x48] sm:$0xff] }
 0x29d   :  { %765 = vmatpush.bf16.msrb.mxu2 %v1168_v22 }
 0x29e   :  { %v1640_v30 = vadd.f32 %v481_v28, %v1600_v7 }
 0x2a0   :  { %v492_v31 = vpack.c.bf16 %v1640_v30, %v1637_v29  ;;  %v597_v16 = vmul.f32 %v595_v14, %v1640_v30 }
 0x2a1   :  { %766 = vmatpush.bf16.msrb.mxu2 %v1167_v23 }
 0x2a2   :  { %543 = vmatpush.bf16.msrb.mxu1 %v492_v31 }
 0x2a5   :  { %1027 = vmatmul.msk.bf16.vlgmr.msrb.gmra.mxu1 %vm224_vm0, %v1155_v32  ;;  %767 = vmatpush.bf16.msrb.mxu2 %v1166_v24 }
 0x2a6   :  { %671 = vmatpush.bf16.msra.mxu1 %v1165_v34 }
 0x2aa   :  { %672 = vmatpush.bf16.msra.mxu1 %v1164_v36  ;;  %v1180_v36 = vld [vmem:[#allocation14 + $0x30] sm:$0xff] }
 0x2ae   :  { %673 = vmatpush.bf16.msra.mxu1 %v1163_v39  ;;  %v1179_v39 = vld [vmem:[#allocation14 + $0x28] sm:$0xff] }
 0x2b2   :  { %674 = vmatpush.bf16.msra.mxu1 %v1162_v46 }
 0x2b5   :  { %1028 = vmatmul.msk.bf16.gmra.mxu1 %vm224_vm0, %v1156_v33 }
 0x2b6   :  { %675 = vmatpush.bf16.msra.mxu1 %v1161_v52 }
 0x2ba   :  { %676 = vmatpush.bf16.msra.mxu1 %v1160_v4 }
 0x2be   :  { %677 = vmatpush.bf16.msra.mxu1 %v1159_v5 }
 0x2c2   :  { %678 = vmatpush.bf16.msra.mxu1 %v1158_v8 }
 0x322   :  { %v545_v6 = vpop.f32.mrf.mxu1 }
 0x323   :  { %v546_v60 = vadd.f32 %v545_v6, %v516_v55 }
 0x325   :  { %v555_v1 = vmax.f32 %v546_v60, 0.0  ;;  %v796_v60 = vld [vmem:[%s1706_s15] sm:$0x1] }
 0x32a   :  { %v547_v7 = vpop.f32.mrf.mxu1 }
 0x32b   :  { %v548_v58 = vadd.f32 %v547_v7, %v517_v53  ;;  %v1176_v53 = vld [vmem:[#allocation14 + $0x10] sm:$0xff] }
 0x32d   :  { %v556_v63 = vmax.f32 %v548_v58, 0.0 }
 0x32f   :  { %v569_v2 = vpack.c.bf16 %v556_v63, %v555_v1 }
 0x332   :  { %v550_v45 = vpop.f32.mrf.mxu1 }
 0x333   :  { %v551_v56 = vadd.f32 %v550_v45, %v518_v51  ;;  %v1226_v45 = vld [vmem:[%s1705_s14 + $0x1] ss:$0 sm:$0xff]  ;;  %s1455_s14 = smov [#allocation17]  }
 0x334   :  { %s914_s16 = sshll.u32 %s1455_s14, 4  ;;  %s915_s16 = int_to_ptr.vmem [resolvable:$true] %s914_s16 }
 0x335   :  { %v557_v61 = vmax.f32 %v551_v56, 0.0  ;;  %v1175_v56 = vld [vmem:[#allocation14 + $0x8] sm:$0xff] }
 0x33a   :  { %v552_v57 = vpop.f32.mrf.mxu1 }
 0x33b   :  { %v553_v59 = vadd.f32 %v552_v57, %v519_v54 }
 0x33d   :  { %v558_v62 = vmax.f32 %v553_v59, 0.0 }
 0x33f   :  { %v570_v0 = vpack.c.bf16 %v558_v62, %v557_v61 }
 0x341   :  { %585 = vmatpush.bf16.msra.mxu0 %v570_v0 }
 0x345   :  { %586 = vmatpush.bf16.msra.mxu0 %v569_v2 }
 0x348   :  { %1033 = vmatmul.msk.bf16.vlgmr.msra.gmra.mxu0 %vm271_vm1, %v1157_v3 }
 0x349   :  { %885 = vmatpush.bf16.msrb.mxu0 %v1181_v35 }
 0x34d   :  { %886 = vmatpush.bf16.msrb.mxu0 %v1180_v36 }
 0x351   :  { %887 = vmatpush.bf16.msrb.mxu0 %v1179_v39 }
 0x355   :  { %888 = vmatpush.bf16.msrb.mxu0 %v1178_v43 }
 0x359   :  { %889 = vmatpush.bf16.msrb.mxu0 %v1177_v48 }
 0x35d   :  { %890 = vmatpush.bf16.msrb.mxu0 %v1176_v53 }
 0x361   :  { %891 = vmatpush.bf16.msrb.mxu0 %v1175_v56 }
 0x3c5   :  { %v588_v13 = vpop.f32.mrf.mxu0 }
 0x3c6   :  { %v598_v18 = vadd.f32 %v596_v15, %v588_v13 }
 0x3cd   :  { %v590_v17 = vpop.f32.mrf.mxu0 }
 0x3ce   :  { %v599_v19 = vadd.f32 %v597_v16, %v590_v17 }
 0x3d0   :  { %v600_v20 = vpack.c.bf16 %v599_v19, %v598_v18 }
 0x3d2   :  { %679 = vmatmul.bf16.vlgmr.msra.gmra.mxu1 %v600_v20 }
 0x44f   :  { %v680_v25 = vpop.f32.mrf.mxu1 }
 0x450   :  { %v681_v27 = vadd.f32 %v1223_v26, %v680_v25 }
 0x452   :  { %v685_v31 = vmul.f32 0.2, %v681_v27 }
 0x454   :  { %v687_v6 = vmax.f32 %v681_v27, %v685_v31 }
 0x457   :  { %v682_v28 = vpop.f32.mrf.mxu1 }
 0x458   :  { %v683_v32 = vadd.f32 %v1223_v26, %v682_v28 }
 0x45a   :  { %v686_v33 = vmul.f32 0.2, %v683_v32 }
 0x45c   :  { %v688_v34 = vmax.f32 %v683_v32, %v686_v33 }
 0x45e   :  { %v689_v7 = vpack.c.bf16 %v688_v34, %v687_v6 }
 0x460   :  { %768 = vmatmul.bf16.vlgmr.msrb.gmra.mxu2 %v689_v7 }
 0x4e3   :  { %v769_v38 = vpop.f32.mrf.mxu2 }
 0x4e4   :  { %v770_v40 = vadd.f32 %v1224_v37, %v769_v38 }
 0x4e6   :  { %v774_v41 = vmul.f32 0.2, %v770_v40 }
 0x4e8   :  { %v776_v44 = vmax.f32 %v770_v40, %v774_v41 }
 0x4ea   :  { %v783_v46 = vmul.f32 %v1225_v42, %v776_v44 }
 0x4eb   :  { %v771_v47 = vpop.f32.mrf.mxu2 }
 0x4ec   :  { %v790_v49 = vadd.f32 %v1226_v45, %v783_v46  ;;  %v772_v50 = vadd.f32 %v1224_v37, %v771_v47 }
 0x4ee   :  { %v792_v51 = vadd.f32 %v790_v49, %v1637_v29  ;;  %v775_v52 = vmul.f32 0.2, %v772_v50  ;;  %v1174_v29 = vld [vmem:[#allocation14] sm:$0xff] }
 0x4ef   :  { %892 = vmatpush.bf16.msrb.mxu0 %v1174_v29 }
 0x4f0   :  { %794 = vst [vmem:[#allocation17] sm:$0xff] %v792_v51  ;;  %v777_v54 = vmax.f32 %v772_v50, %v775_v52 }
 0x4f2   :  { %v784_v55 = vmul.f32 %v1225_v42, %v777_v54 }
 0x4f4   :  { %v791_v57 = vadd.f32 %v1226_v45, %v784_v55 }
 0x4f6   :  { %v793_v58 = vadd.f32 %v791_v57, %v1640_v30  ;;  %v1227_v30 = vld [vmem:[%s1708_s17] ss:$0 sm:$0xff] }
 0x4f8   :  { %795 = vst [vmem:[#allocation17 + $0x8] sm:$0xff] %v793_v58  ;;  %v799_v59 = vpack.c.bf16 %v793_v58, %v792_v51 }
 0x4f9   :  { %922 = dma.vmem_to_hbm [thread:$0]  %s915_s16, 256, %s917_s2, [#allocation18], %s1456_s23, %s1456_s23, %s1457_s30  }
 0x4fa   :  { %810 = vmatpush.bf16.msra.mxu3 %v799_v59 }
 0x4fd   :  { %1103 = vmatmul.msk.bf16.vlgmr.msra.gmra.mxu3 %vm224_vm0, %v796_v60 }
 0x580   :  { %v812_v61 = vpop.f32.mrf.mxu3 }
 0x581   :  { %v816_v62 = vpack.c.bf16 %v812_v61, %v812_v61 }
 0x583   :  { %893 = vmatmul.bf16.vlgmr.msrb.gmra.mxu0 %v816_v62 }
 0x588   :  { %v814_v63 = vpop.f32.mrf.mxu3 }
 0x600   :  { %v894_v0 = vpop.f32.mrf.mxu0 }
 0x601   :  { %v895_v1 = vadd.f32 %v1227_v30, %v894_v0 }
 0x603   :  { %898 = vst [vmem:[#allocation16] sm:$0x3] %v895_v1 }
 0x604   :  { %909 = dma.vmem_to_hbm [thread:$0]  %s905_s27, 32, %s907_s3, [#allocation5]  }
 0x608   :  { %v896_v2 = vpop.f32.mrf.mxu0 }
 0x609   :  { %1442 = dma.done.wait [#allocation5], 32  }
 0x60a   :  { %1443 = vsyncadd [#allocation5], 4294967264 }
 0x60b   :  { %1444 = dma.done.wait [#allocation18], 256  }
 0x60c   :  { %1445 = vsyncadd [#allocation18], 4294967040 }
 0x60d   :  { %931 = vsyncpa [#allocation4], 1 }
 0x60e   :  { %932 = vsyncpa [#allocation9], 1 }
 0x60f   :  { %933 = vsyncpa [#allocation12], 1 }
 0x610   :  { %934 = vsyncpa [#allocation15], 1 }
 0x611   :  { %935 = vsyncpa [#allocation5], 1 }
 0x612   :  { %936 = vsyncpa [#allocation18], 1 }
 0x613   :  { %937 = vsyncpa [#allocation6], 1 }

</bundles_post_ra>
